<compile_context>
chip_gen: v7x
topology: tpu7x:2x2x1
jax: 0.10.0
libtpu: 0.0.40
codegen_flags: <defaults>
</compile_context>

<pallas_src>
import functools

import jax
import jax.numpy as jnp
from jax.experimental import pallas as pl
from jax.experimental.pallas import tpu as pltpu

_LANE = 128
_SUBLANE = 8


def _round_up(n, m):
    return ((n + m - 1) // m) * m


def _pinet_kernel(x_ref, w1_ref, b1_ref, w2_ref, b2_ref, w3_ref, b3_ref, o_ref):
    # fc1: cast x to bf16 in-kernel (hides under MXU), f32 MXU accumulation;
    # bias + ReLU in f32.
    h1 = jnp.dot(x_ref[...].astype(jnp.bfloat16), w1_ref[...],
                 preferred_element_type=jnp.float32)
    h1 = jnp.maximum(h1 + b1_ref[...], 0.0)
    # dropout(p=0.2) -> identity (inference mode)
    # TODO(synk): training-mode stochastic dropout (pltpu.prng_random_bits) not emitted.

    # fc2 + bias + ReLU (dim2 zero-padded to 128 lanes; padded lanes stay 0).
    h2 = jnp.dot(h1.astype(jnp.bfloat16), w2_ref[...],
                 preferred_element_type=jnp.float32)
    h2 = jnp.maximum(h2 + b2_ref[...], 0.0)
    # dropout -> identity (inference mode)

    # fc3: output lanes padded to 128; padded bias columns are -inf so the
    # padded logits vanish under exp (w3 rows for padded h2 lanes are zero -> exact).
    logits = jnp.dot(h2.astype(jnp.bfloat16), w3_ref[...],
                     preferred_element_type=jnp.float32) + b3_ref[...]

    # softmax over the output-feature axis (dim=1), f32 math, bf16 store.
    m = jnp.max(logits, axis=1, keepdims=True)
    e = jnp.exp(logits - m)
    denom = jnp.sum(e, axis=1, keepdims=True)
    o_ref[...] = (e * pl.reciprocal(denom, approx=True)).astype(o_ref.dtype)


def prepare_params(params):
    """One-time prep: pad dim2/out_dim to 128 lanes and cast weights to bf16.

    Call once and reuse; avoids re-casting/re-padding the weights on every
    forward call (which would otherwise cost a full HBM pass over the weights).
    Returns (prepared_params, out_dim).
    """
    w1, b1, w2, b2, w3, b3 = params
    dim2 = w2.shape[1]
    out_dim = w3.shape[1]
    dim2_pad = _round_up(dim2, _LANE)
    out_pad = _round_up(out_dim, _LANE)

    if dim2_pad != dim2:
        # zero padding is exact: padded h2 lanes are ReLU(0+0)=0 and hit zero w3 rows.
        w2 = jnp.pad(w2, ((0, 0), (0, dim2_pad - dim2)))
        b2 = jnp.pad(b2, ((0, 0), (0, dim2_pad - dim2)))
        w3 = jnp.pad(w3, ((0, dim2_pad - dim2), (0, 0)))
    if out_pad != out_dim:
        w3 = jnp.pad(w3, ((0, 0), (0, out_pad - out_dim)))
        b3 = jnp.pad(b3, ((0, 0), (0, out_pad - out_dim)),
                     constant_values=-jnp.inf)

    prepared = (w1.astype(jnp.bfloat16), b1.astype(jnp.float32),
                w2.astype(jnp.bfloat16), b2.astype(jnp.float32),
                w3.astype(jnp.bfloat16), b3.astype(jnp.float32))
    return prepared, out_dim


def _vmem_limit_bytes(tb, input_dim, dim1, dim2p, out_pad):
    # Resident weights (bf16, single-buffered via pl.Buffered(1)) + f32 biases.
    weights = 2 * (input_dim * dim1 + dim1 * dim2p + dim2p * out_pad)
    biases = 4 * (dim1 + dim2p + out_pad)
    # Double-buffered x tile (native f32) and bf16 out tile.
    io_tiles = 2 * tb * input_dim * 4 + 2 * tb * out_pad * 2
    # In-kernel temporaries: h1/h2 f32 + bf16 copies, logits/exp f32.
    temps = tb * dim1 * (4 + 2) + tb * dim2p * (4 + 2) + 2 * tb * out_pad * 4
    total = weights + biases + io_tiles + temps
    # 2x headroom + 2 MiB, clamped to [16 MiB, 64 MiB] (v7x per-TC physical).
    return int(min(max(2 * total + (2 << 20), 16 << 20), 64 << 20))


@functools.partial(jax.jit, static_argnames=("out_dim", "block_b"))
def pi_net_forward(x, prepared, *, out_dim, block_b=512):
    w1, b1, w2, b2, w3, b3 = prepared
    B, input_dim = x.shape
    dim1 = w1.shape[1]
    dim2p = w2.shape[1]
    out_pad = w3.shape[1]

    # ---- batch tile: avoid the extra HBM pad pass whenever possible ----
    if B <= block_b:
        tb, b_pad = B, B                       # single tile, no pad
    elif B % block_b == 0:
        tb, b_pad = block_b, B                 # exact tiling, no pad
    else:
        tb = block_b
        b_pad = _round_up(B, tb)
        x = jnp.pad(x, ((0, b_pad - B), (0, 0)))
    # TODO(synk): for very large input_dim on v7x (64 MiB/TC VMEM), add a K-tiled
    # grid axis ("arbitrary", reduction last) for fc1 instead of keeping w1 resident.

    grid = (b_pad // tb,)
    vmem_limit = _vmem_limit_bytes(tb, input_dim, dim1, dim2p, out_pad)

    out = pl.pallas_call(
        _pinet_kernel,
        out_shape=jax.ShapeDtypeStruct((b_pad, out_pad), jnp.bfloat16),
        grid=grid,
        in_specs=[
            # x tile: pipelined (double-buffered), native dtype, cast in-kernel.
            pl.BlockSpec((tb, input_dim), lambda i: (i, 0)),
            # Weights/biases: constant index map -> VMEM-resident, single-buffered.
            pl.BlockSpec((input_dim, dim1), lambda i: (0, 0),
                         pipeline_mode=pl.Buffered(1)),
            pl.BlockSpec((1, dim1), lambda i: (0, 0),
                         pipeline_mode=pl.Buffered(1)),
            pl.BlockSpec((dim1, dim2p), lambda i: (0, 0),
                         pipeline_mode=pl.Buffered(1)),
            pl.BlockSpec((1, dim2p), lambda i: (0, 0),
                         pipeline_mode=pl.Buffered(1)),
            pl.BlockSpec((dim2p, out_pad), lambda i: (0, 0),
                         pipeline_mode=pl.Buffered(1)),
            pl.BlockSpec((1, out_pad), lambda i: (0, 0),
                         pipeline_mode=pl.Buffered(1)),
        ],
        out_specs=pl.BlockSpec((tb, out_pad), lambda i: (i, 0)),
        compiler_params=pltpu.CompilerParams(
            dimension_semantics=("parallel",),
            vmem_limit_bytes=vmem_limit),
    )(x, w1, b1, w2, b2, w3, b3)

    if b_pad != B or out_pad != out_dim:
        out = out[:B, :out_dim]
    return out


def init_params(key, input_dim, out_dim, dim1=1024, dim2=64):
    k1, k2, k3, k4, k5, k6 = jax.random.split(key, 6)
    # weights stored as [in, out] (transposed vs torch): kernel computes x @ W + b
    w1 = jax.random.normal(k1, (input_dim, dim1), jnp.float32) * (1.0 / jnp.sqrt(input_dim))
    b1 = jax.random.normal(k2, (1, dim1), jnp.float32) * 0.01
    w2 = jax.random.normal(k3, (dim1, dim2), jnp.float32) * (1.0 / jnp.sqrt(dim1))
    b2 = jax.random.normal(k4, (1, dim2), jnp.float32) * 0.01
    w3 = jax.random.normal(k5, (dim2, out_dim), jnp.float32) * (1.0 / jnp.sqrt(dim2))
    b3 = jax.random.normal(k6, (1, out_dim), jnp.float32) * 0.01
    return (w1, b1, w2, b2, w3, b3)


def _reference(x, params):
    w1, b1, w2, b2, w3, b3 = params
    h1 = jnp.maximum(x @ w1 + b1, 0.0)
    h2 = jnp.maximum(h1 @ w2 + b2, 0.0)
    logits = h2 @ w3 + b3
    return jax.nn.softmax(logits, axis=1)


if __name__ == "__main__":
    key = jax.random.PRNGKey(0)
    kx, kp = jax.random.split(key)

    B, input_dim, out_dim = 8, 32, 16
    x = jax.random.normal(kx, (B, input_dim), jnp.float32)
    params = init_params(kp, input_dim, out_dim)

    prepared, od = prepare_params(params)           # one-time weight prep (bf16 + padding)
    out = pi_net_forward(x, prepared, out_dim=od)
    out = jax.block_until_ready(out)

    ref = _reference(x, params)
    assert out.shape == (B, out_dim)
    assert out.dtype == jnp.bfloat16
    out_f32 = out.astype(jnp.float32)
    # bf16 matmul operands + bf16 output + approx reciprocal -> loosened tolerances
    assert jnp.allclose(out_f32, ref, atol=2e-2, rtol=2e-2)
    # approx reciprocal + bf16 store: rows sum to 1 only within ~1e-2
    assert jnp.allclose(jnp.sum(out_f32, axis=1), jnp.ones((B,)), atol=1e-2)

    print("KERNEL_OK")
</pallas_src>

<mosaic_0001>
module attributes {stable_mosaic.version = 11 : i64} {
  func.func @_pinet_kernel(%arg0: i32, %arg1: memref<8x32xf32, #tpu.memory_space<vmem>>, %arg2: memref<32x1024xbf16, #tpu.memory_space<vmem>>, %arg3: memref<1x1024xf32, #tpu.memory_space<vmem>>, %arg4: memref<1024x128xbf16, #tpu.memory_space<vmem>>, %arg5: memref<1x128xf32, #tpu.memory_space<vmem>>, %arg6: memref<128x128xbf16, #tpu.memory_space<vmem>>, %arg7: memref<1x128xf32, #tpu.memory_space<vmem>>, %arg8: memref<8x128xbf16, #tpu.memory_space<vmem>>) attributes {dimension_semantics = [#tpu.dimension_semantics<parallel>], iteration_bounds = array<i64: 1>, scalar_prefetch = 0 : i64, scratch_operands = 0 : i64, tpu.core_type = #tpu.core_type<tc>, window_params = [{transform_indices = @transform_0, window_bounds = array<i64: 8, 32>}, {pipeline_mode = #tpu.pipeline_mode<synchronous>, transform_indices = @transform_1, window_bounds = array<i64: 32, 1024>}, {pipeline_mode = #tpu.pipeline_mode<synchronous>, transform_indices = @transform_2, window_bounds = array<i64: 1, 1024>}, {pipeline_mode = #tpu.pipeline_mode<synchronous>, transform_indices = @transform_3, window_bounds = array<i64: 1024, 128>}, {pipeline_mode = #tpu.pipeline_mode<synchronous>, transform_indices = @transform_4, window_bounds = array<i64: 1, 128>}, {pipeline_mode = #tpu.pipeline_mode<synchronous>, transform_indices = @transform_5, window_bounds = array<i64: 128, 128>}, {pipeline_mode = #tpu.pipeline_mode<synchronous>, transform_indices = @transform_6, window_bounds = array<i64: 1, 128>}, {transform_indices = @transform_7, window_bounds = array<i64: 8, 128>}]} {
    %c0 = arith.constant 0 : index
    %c0_0 = arith.constant 0 : index
    %0 = vector.load %arg1[%c0, %c0_0] : memref<8x32xf32, #tpu.memory_space<vmem>>, vector<8x32xf32>
    %1 = arith.truncf %0 : vector<8x32xf32> to vector<8x32xbf16>
    %c0_1 = arith.constant 0 : index
    %c0_2 = arith.constant 0 : index
    %2 = vector.load %arg2[%c0_1, %c0_2] : memref<32x1024xbf16, #tpu.memory_space<vmem>>, vector<32x1024xbf16>
    %cst = arith.constant dense<0.000000e+00> : vector<8x1024xf32>
    %3 = tpu.matmul %1, %2, %cst {dimension_numbers = #tpu.dot_dimension_numbers<[1], [0], [0], [1], [0, 0, 1, 1], [], []>} : vector<8x32xbf16>, vector<32x1024xbf16>, vector<8x1024xf32> -> vector<8x1024xf32>
    %c0_3 = arith.constant 0 : index
    %c0_4 = arith.constant 0 : index
    %4 = vector.load %arg3[%c0_3, %c0_4] : memref<1x1024xf32, #tpu.memory_space<vmem>>, vector<1x1024xf32>
    %5 = vector.broadcast %4 : vector<1x1024xf32> to vector<8x1024xf32>
    %6 = arith.addf %3, %5 : vector<8x1024xf32>
    %cst_5 = arith.constant 0.000000e+00 : f32
    %7 = vector.broadcast %cst_5 : f32 to vector<8x1024xf32>
    %8 = arith.maximumf %6, %7 : vector<8x1024xf32>
    %9 = arith.truncf %8 : vector<8x1024xf32> to vector<8x1024xbf16>
    %c0_6 = arith.constant 0 : index
    %c0_7 = arith.constant 0 : index
    %10 = vector.load %arg4[%c0_6, %c0_7] : memref<1024x128xbf16, #tpu.memory_space<vmem>>, vector<1024x128xbf16>
    %cst_8 = arith.constant dense<0.000000e+00> : vector<8x128xf32>
    %11 = tpu.matmul %9, %10, %cst_8 {dimension_numbers = #tpu.dot_dimension_numbers<[1], [0], [0], [1], [0, 0, 1, 1], [], []>} : vector<8x1024xbf16>, vector<1024x128xbf16>, vector<8x128xf32> -> vector<8x128xf32>
    %c0_9 = arith.constant 0 : index
    %c0_10 = arith.constant 0 : index
    %12 = vector.load %arg5[%c0_9, %c0_10] : memref<1x128xf32, #tpu.memory_space<vmem>>, vector<1x128xf32>
    %13 = vector.broadcast %12 : vector<1x128xf32> to vector<8x128xf32>
    %14 = arith.addf %11, %13 : vector<8x128xf32>
    %cst_11 = arith.constant 0.000000e+00 : f32
    %15 = vector.broadcast %cst_11 : f32 to vector<8x128xf32>
    %16 = arith.maximumf %14, %15 : vector<8x128xf32>
    %17 = arith.truncf %16 : vector<8x128xf32> to vector<8x128xbf16>
    %c0_12 = arith.constant 0 : index
    %c0_13 = arith.constant 0 : index
    %18 = vector.load %arg6[%c0_12, %c0_13] : memref<128x128xbf16, #tpu.memory_space<vmem>>, vector<128x128xbf16>
    %cst_14 = arith.constant dense<0.000000e+00> : vector<8x128xf32>
    %19 = tpu.matmul %17, %18, %cst_14 {dimension_numbers = #tpu.dot_dimension_numbers<[1], [0], [0], [1], [0, 0, 1, 1], [], []>} : vector<8x128xbf16>, vector<128x128xbf16>, vector<8x128xf32> -> vector<8x128xf32>
    %c0_15 = arith.constant 0 : index
    %c0_16 = arith.constant 0 : index
    %20 = vector.load %arg7[%c0_15, %c0_16] : memref<1x128xf32, #tpu.memory_space<vmem>>, vector<1x128xf32>
    %21 = vector.broadcast %20 : vector<1x128xf32> to vector<8x128xf32>
    %22 = arith.addf %19, %21 : vector<8x128xf32>
    %cst_17 = arith.constant dense<0xFF800000> : vector<8xf32>
    %23 = vector.multi_reduction <maximumf>, %22, %cst_17 [1] : vector<8x128xf32> to vector<8xf32>
    %24 = vector.shape_cast %23 : vector<8xf32> to vector<8x1xf32>
    %25 = vector.broadcast %24 : vector<8x1xf32> to vector<8x128xf32>
    %26 = arith.subf %22, %25 : vector<8x128xf32>
    %27 = math.exp %26 : vector<8x128xf32>
    %cst_18 = arith.constant dense<0.000000e+00> : vector<8xf32>
    %28 = vector.multi_reduction <add>, %27, %cst_18 [1] : vector<8x128xf32> to vector<8xf32>
    %29 = vector.shape_cast %28 : vector<8xf32> to vector<8x1xf32>
    %30 = tpu.reciprocal %29 {approx = true} : vector<8x1xf32> -> vector<8x1xf32>
    %31 = vector.broadcast %30 : vector<8x1xf32> to vector<8x128xf32>
    %32 = arith.mulf %27, %31 : vector<8x128xf32>
    %33 = arith.truncf %32 : vector<8x128xf32> to vector<8x128xbf16>
    %c0_19 = arith.constant 0 : index
    %c0_20 = arith.constant 0 : index
    %34 = vector.load %arg8[%c0_19, %c0_20] : memref<8x128xbf16, #tpu.memory_space<vmem>>, vector<8x128xbf16>
    tpu.vector_store %arg8[%c0_19, %c0_20], %33 {strides = array<i32>} : memref<8x128xbf16, #tpu.memory_space<vmem>>, vector<8x128xbf16>,
    return
  }
  func.func @transform_0(%arg0: i32) -> (i32, i32) {
    %c0_i32 = arith.constant 0 : i32
    %c0_i32_0 = arith.constant 0 : i32
    return %arg0, %c0_i32 : i32, i32
  }
  func.func @transform_1(%arg0: i32) -> (i32, i32) {
    %c0_i32 = arith.constant 0 : i32
    %c0_i32_0 = arith.constant 0 : i32
    %c0_i32_1 = arith.constant 0 : i32
    return %c0_i32, %c0_i32_0 : i32, i32
  }
  func.func @transform_2(%arg0: i32) -> (i32, i32) {
    %c0_i32 = arith.constant 0 : i32
    %c0_i32_0 = arith.constant 0 : i32
    %c0_i32_1 = arith.constant 0 : i32
    return %c0_i32, %c0_i32_0 : i32, i32
  }
  func.func @transform_3(%arg0: i32) -> (i32, i32) {
    %c0_i32 = arith.constant 0 : i32
    %c0_i32_0 = arith.constant 0 : i32
    %c0_i32_1 = arith.constant 0 : i32
    return %c0_i32, %c0_i32_0 : i32, i32
  }
  func.func @transform_4(%arg0: i32) -> (i32, i32) {
    %c0_i32 = arith.constant 0 : i32
    %c0_i32_0 = arith.constant 0 : i32
    %c0_i32_1 = arith.constant 0 : i32
    return %c0_i32, %c0_i32_0 : i32, i32
  }
  func.func @transform_5(%arg0: i32) -> (i32, i32) {
    %c0_i32 = arith.constant 0 : i32
    %c0_i32_0 = arith.constant 0 : i32
    %c0_i32_1 = arith.constant 0 : i32
    return %c0_i32, %c0_i32_0 : i32, i32
  }
  func.func @transform_6(%arg0: i32) -> (i32, i32) {
    %c0_i32 = arith.constant 0 : i32
    %c0_i32_0 = arith.constant 0 : i32
    %c0_i32_1 = arith.constant 0 : i32
    return %c0_i32, %c0_i32_0 : i32, i32
  }
  func.func @transform_7(%arg0: i32) -> (i32, i32) {
    %c0_i32 = arith.constant 0 : i32
    %c0_i32_0 = arith.constant 0 : i32
    return %arg0, %c0_i32 : i32, i32
  }
}

</mosaic_0001>

<bundles_post_ra>
// kernel: pi_net_forward.1
= control target key start
LH: loop header
LB: loop body
LE: loop exit
PB: predicated region body
PF: predicated region fallthrough
CT: control target
= control target key end

     0   :  { %12 = vsyncpa [#allocation3], 0  ;;  %s1847_s0 = inlined_call_operand.hbm [shape: f32[8,32], index: 0, kind: input, shape index: {}]   ;;  %s1848_s1 = inlined_call_operand.hbm [shape: bf16[32,1024], index: 1, kind: input, shape index: {}]   ;;  %s1849_s2 = inlined_call_operand.hbm [shape: f32[1,1024], index: 2, kind: input, shape index: {}]   ;;  %s1850_s3 = inlined_call_operand.hbm [shape: bf16[1024,128], index: 3, kind: input, shape index: {}]   ;;  %s1851_s4 = inlined_call_operand.vmem [shape: f32[1,128], index: 4, kind: input, shape index: {}]   ;;  %s1852_s5 = inlined_call_operand.hbm [shape: bf16[128,128], index: 5, kind: input, shape index: {}]   ;;  %s1853_s6 = inlined_call_operand.vmem [shape: f32[1,128], index: 6, kind: input, shape index: {}]   ;;  %s1854_s7 = inlined_call_operand.hbm [shape: bf16[8,128], index: 7, kind: output, shape index: {}]  }
   0x1   :  { %13 = vsyncpa [#allocation6], 0 }
   0x2   :  { %14 = vsyncpa [#allocation9], 0 }
   0x3   :  { %15 = vsyncpa [#allocation4], 0  ;;  %s1676_s24 = smov [#allocation5]   ;;  %s1536_s28 = scalar_lea.hbm %s1848_s1, 2048 }
   0x4   :  { %s31_s25 = sshll.u32 %s1676_s24, 4  ;;  %p1537_p0 = scmp.ne.s32.totalorder %s1848_s1, %s1536_s28  ;;  %s32_s25 = int_to_ptr.vmem [resolvable:$true] %s31_s25 }
   0x5   :  { %p1540_p1 = scmp.lt.u32.totalorder %s1536_s28, %s1848_s1 }
   0x7   :  { %p1542_p2 = pnand %p1540_p1, %p1537_p0 }
   0x9   :  { %1545 = shalt.err (!%p1542_p2)
}
   0xa   :  { %s1546_s10 = scalar_lea.vmem %s32_s25, 2048  ;;  %p1551_p4 = scmp.lt.s32.totalorder %s32_s25, %s32_s25 }
   0xb   :  { %p1547_p3 = scmp.ne.s32.totalorder %s32_s25, %s1546_s10  ;;  %p1552_p5 = scmp.lt.s32.totalorder %s1546_s10, %s1546_s10 }
   0xd   :  { %p1553_p6 = por %p1552_p5, %p1551_p4 }
   0xf   :  { %p1554_p7 = pnand %p1553_p6, %p1547_p3 }
  0x11   :  { %1557 = shalt.err (!%p1554_p7)
}
  0x12   :  { %s1677_s11 = smov 512   ;;  %s1678_s12 = smov 32  }
  0x13   :  { %37 = dma.hbm_to_vmem [thread:$0]  %s1848_s1, 2048, %s32_s25, [#allocation6], %s1677_s11, %s1677_s11, %s1678_s12  }
  0x14   :  { %s1679_s15 = smov [#allocation8]   ;;  %s1558_s19 = scalar_lea.hbm %s1850_s3, 8192 }
  0x15   :  { %s53_s16 = sshll.u32 %s1679_s15, 4  ;;  %p1559_p8 = scmp.ne.s32.totalorder %s1850_s3, %s1558_s19  ;;  %s54_s16 = int_to_ptr.vmem [resolvable:$true] %s53_s16 }
  0x16   :  { %p1562_p9 = scmp.lt.u32.totalorder %s1558_s19, %s1850_s3 }
  0x18   :  { %p1564_p10 = pnand %p1562_p9, %p1559_p8 }
  0x1a   :  { %1567 = shalt.err (!%p1564_p10)
}
  0x1b   :  { %s1568_s24 = scalar_lea.vmem %s54_s16, 8192  ;;  %p1573_p12 = scmp.lt.s32.totalorder %s54_s16, %s54_s16 }
  0x1c   :  { %p1569_p11 = scmp.ne.s32.totalorder %s54_s16, %s1568_s24  ;;  %p1574_p13 = scmp.lt.s32.totalorder %s1568_s24, %s1568_s24 }
  0x1e   :  { %p1575_p0 = por %p1574_p13, %p1573_p12 }
  0x20   :  { %p1576_p1 = pnand %p1575_p0, %p1569_p11 }
  0x22   :  { %1579 = shalt.err (!%p1576_p1)
}
  0x23   :  { %s1680_s1 = smov 64   ;;  %s1681_s25 = smov 4  }
  0x24   :  { %59 = dma.hbm_to_vmem [thread:$0]  %s1850_s3, 8192, %s54_s16, [#allocation9], %s1680_s1, %s1680_s1, %s1681_s25  }
  0x25   :  { %s1682_s28 = smov [#allocation2]   ;;  %s1683_s30 = smov [#allocation7]  }
  0x26   :  { %s22_s29 = sshll.u32 %s1682_s28, 4  ;;  %s44_s8 = sshll.u32 %s1683_s30, 4  ;;  %s23_s29 = int_to_ptr.vmem [resolvable:$true] %s22_s29  ;;  %s45_s8 = int_to_ptr.vmem [resolvable:$true] %s44_s8 }
  0x27   :  { %s1580_s11 = scalar_lea.hbm %s1847_s0, 128 }
  0x28   :  { %p1581_p2 = scmp.ne.s32.totalorder %s1847_s0, %s1580_s11  ;;  %p1584_p3 = scmp.lt.u32.totalorder %s1580_s11, %s1847_s0 }
  0x2a   :  { %p1586_p4 = pnand %p1584_p3, %p1581_p2 }
  0x2c   :  { %1589 = shalt.err (!%p1586_p4)
}
  0x2d   :  { %s1590_s3 = scalar_lea.vmem %s23_s29, 128  ;;  %p1595_p6 = scmp.lt.s32.totalorder %s23_s29, %s23_s29 }
  0x2e   :  { %p1591_p5 = scmp.ne.s32.totalorder %s23_s29, %s1590_s3  ;;  %p1596_p7 = scmp.lt.s32.totalorder %s1590_s3, %s1590_s3 }
  0x30   :  { %p1597_p8 = por %p1596_p7, %p1595_p6 }
  0x32   :  { %p1598_p9 = pnand %p1597_p8, %p1591_p5 }
  0x34   :  { %1601 = shalt.err (!%p1598_p9)
}
  0x35   :  { %25 = dma.hbm_to_vmem [thread:$0]  %s1847_s0, 128, %s23_s29, [#allocation3]  }
  0x36   :  { %s1602_s20 = scalar_lea.hbm %s1849_s2, 128 }
  0x37   :  { %p1603_p10 = scmp.ne.s32.totalorder %s1849_s2, %s1602_s20  ;;  %p1606_p11 = scmp.lt.u32.totalorder %s1602_s20, %s1849_s2 }
  0x39   :  { %p1608_p12 = pnand %p1606_p11, %p1603_p10 }
  0x3b   :  { %1611 = shalt.err (!%p1608_p12)
}
  0x3c   :  { %s1612_s26 = scalar_lea.vmem %s45_s8, 128  ;;  %p1617_p0 = scmp.lt.s32.totalorder %s45_s8, %s45_s8 }
  0x3d   :  { %p1613_p13 = scmp.ne.s32.totalorder %s45_s8, %s1612_s26  ;;  %p1618_p1 = scmp.lt.s32.totalorder %s1612_s26, %s1612_s26 }
  0x3f   :  { %p1619_p2 = por %p1618_p1, %p1617_p0 }
  0x41   :  { %p1620_p3 = pnand %p1619_p2, %p1613_p13 }
  0x43   :  { %1623 = shalt.err (!%p1620_p3)
}
  0x44   :  { %47 = dma.hbm_to_vmem [thread:$0]  %s1849_s2, 128, %s45_s8, [#allocation6]  }
  0x45   :  { %s1684_s28 = smov [#allocation10]   ;;  %s1624_s10 = scalar_lea.hbm %s1852_s5, 1024 }
  0x46   :  { %s67_s29 = sshll.u32 %s1684_s28, 4  ;;  %p1625_p4 = scmp.ne.s32.totalorder %s1852_s5, %s1624_s10  ;;  %s68_s29 = int_to_ptr.vmem [resolvable:$true] %s67_s29 }
  0x47   :  { %p1628_p5 = scmp.lt.u32.totalorder %s1624_s10, %s1852_s5 }
  0x49   :  { %p1630_p6 = pnand %p1628_p5, %p1625_p4 }
  0x4b   :  { %1633 = shalt.err (!%p1630_p6)
}
  0x4c   :  { %s1634_s15 = scalar_lea.vmem %s68_s29, 1024  ;;  %p1639_p8 = scmp.lt.s32.totalorder %s68_s29, %s68_s29 }
  0x4d   :  { %p1635_p7 = scmp.ne.s32.totalorder %s68_s29, %s1634_s15  ;;  %p1640_p9 = scmp.lt.s32.totalorder %s1634_s15, %s1634_s15 }
  0x4f   :  { %p1641_p10 = por %p1640_p9, %p1639_p8 }
  0x51   :  { %p1642_p11 = pnand %p1641_p10, %p1635_p7 }
  0x53   :  { %1645 = shalt.err (!%p1642_p11)
}
  0x54   :  { %73 = dma.hbm_to_vmem [thread:$0]  %s1852_s5, 1024, %s68_s29, [#allocation9], %s1680_s1, %s1680_s1, %s1681_s25  }
  0x55   :  { %1668 = dma.done.wait [#allocation3], 128  }
  0x56   :  { %1669 = vsyncadd [#allocation3], 4294967168 }
  0x57   :  { %1670 = dma.done.wait [#allocation6], 2176  }
  0x58   :  { %1671 = vsyncadd [#allocation6], 4294965120 }
  0x59   :  { %1672 = dma.done.wait [#allocation9], 9216  }
  0x5a   :  { %1673 = vsyncadd [#allocation9], 4294958080  ;;  %v1685_v0 = vmov 0   ;;  %v94_v1 = vld [vmem:[#allocation5] sm:$0xff]  ;;  %v95_v8 = vld [vmem:[#allocation5 + $0x8] sm:$0xff]  ;;  %vm232_vm0 = vcmask 261120  }
  0x5b   :  { %268 = vmatprep.mubr.bf16.mxu1 %v1685_v0  ;;  %v98_v2 = vld [vmem:[#allocation5 + $0x20] sm:$0xff]  ;;  %v99_v9 = vld [vmem:[#allocation5 + $0x28] sm:$0xff]  ;;  %v92_v11 = vld [vmem:[#allocation2] sm:$0xff]  ;;  %vm1687_vm1 = vmmov 0   ;;  %s1688_s3 = smov [#allocation11]  }
  0x5c   :  { %v102_v3 = vld [vmem:[#allocation5 + $0x40] sm:$0xff]  ;;  %v1237_v4 = vcombine.high %v94_v1, %v98_v2  ;;  %v1236_v5 = vcombine.low %v94_v1, %v98_v2  ;;  %v1239_v12 = vcombine.high %v95_v8, %v99_v9  ;;  %v103_v13 = vld [vmem:[#allocation5 + $0x48] sm:$0xff]  ;;  %v1796_v16 = vpack.c.bf16 %v92_v11, %v92_v11  ;;  %v96_v19 = vld [vmem:[#allocation5 + $0x10] sm:$0xff]  ;;  %s1225_s16 = sshll.u32 %s1688_s3, 4  ;;  %s1226_s16 = int_to_ptr.vmem [resolvable:$true] %s1225_s16 }
  0x5d   :  { %v106_v6 = vld [vmem:[#allocation5 + $0x60] sm:$0xff]  ;;  %v107_v14 = vld [vmem:[#allocation5 + $0x68] sm:$0xff]  ;;  %v1238_v18 = vcombine.low %v95_v8, %v99_v9  ;;  %v100_v20 = vld [vmem:[#allocation5 + $0x30] sm:$0xff]  ;;  %p1651_p13 = scmp.lt.s32.totalorder %s1226_s16, %s1226_s16 }
  0x5e   :  { %v1245_v7 = vcombine.high %v102_v3, %v106_v6  ;;  %236 = vmatprep.subr.bf16.mxu1 %v1237_v4  ;;  %v1244_v10 = vcombine.low %v102_v3, %v106_v6  ;;  %v1460_v15 = vld [vmem:[#allocation8 + $0x40] sm:$0xff]   ;;  %v1462_v21 = vld [vmem:[#allocation8 + $0x48] sm:$0xff]   ;;  %v1247_v22 = vcombine.high %v103_v13, %v107_v14  ;;  %v1464_v24 = vld [vmem:[#allocation8 + $0x50] sm:$0xff]   ;;  %v1246_v25 = vcombine.low %v103_v13, %v107_v14 }
  0x5f   :  { %237 = vmatpush1.bf16.msra.mxu1 %v1236_v5  ;;  %v1461_v17 = vld [vmem:[#allocation8] sm:$0xff]   ;;  %1330 = vmatprep.subr.bf16.mxu0 %v1460_v15  ;;  %v1463_v23 = vld [vmem:[#allocation8 + $0x8] sm:$0xff]   ;;  %v1241_v28 = vcombine.high %v96_v19, %v100_v20  ;;  %v1466_v29 = vld [vmem:[#allocation8 + $0x10] sm:$0xff]   ;;  %v1240_v31 = vcombine.low %v96_v19, %v100_v20  ;;  %v112_v5 = vlaneseq }
  0x60   :  { %238 = vmatprep.subr.bf16.mxu1 %v1245_v7  ;;  %1331 = vmatpush3.bf16.msra.mxu0 %v1461_v17  ;;  %v104_v26 = vld [vmem:[#allocation5 + $0x50] sm:$0xff]  ;;  %v1468_v30 = vld [vmem:[#allocation8 + $0x58] sm:$0xff]   ;;  %v97_v32 = vld [vmem:[#allocation5 + $0x18] sm:$0xff] }
  0x61   :  { %1332 = vmatprep.subr.bf16.mxu0 %v1462_v21  ;;  %v108_v27 = vld [vmem:[#allocation5 + $0x70] sm:$0xff]  ;;  %v101_v33 = vld [vmem:[#allocation5 + $0x38] sm:$0xff]  ;;  %v1470_v35 = vld [vmem:[#allocation8 + $0x18] sm:$0xff]   ;;  %v1809_v6 = vshrl.u32 %v112_v5, 7 }
  0x62   :  { %v1249_v34 = vcombine.high %v104_v26, %v108_v27  ;;  %v1472_v36 = vld [vmem:[#allocation8 + $0x60] sm:$0xff]   ;;  %v1248_v37 = vcombine.low %v104_v26, %v108_v27  ;;  %v105_v38 = vld [vmem:[#allocation5 + $0x58] sm:$0xff]  ;;  %v1243_v40 = vcombine.high %v97_v32, %v101_v33  ;;  %v1476_v42 = vld [vmem:[#allocation8 + $0x68] sm:$0xff]   ;;  %v1242_v43 = vcombine.low %v97_v32, %v101_v33 }
  0x63   :  { %239 = vmatpush1.bf16.msra.mxu1 %v1244_v10  ;;  %v109_v39 = vld [vmem:[#allocation5 + $0x78] sm:$0xff]  ;;  %v1474_v41 = vld [vmem:[#allocation8 + $0x20] sm:$0xff]   ;;  %v1478_v45 = vld [vmem:[#allocation8 + $0x28] sm:$0xff]   ;;  %v114_v7 = vsub.s32 0, %v1809_v6  ;;  %v118_v9 = vsub.s32 1, %v1809_v6  ;;  %v122_v15 = vsub.s32 2, %v1809_v6 }
  0x64   :  { %277 = vmatprep.subr.bf16.mxu1 %v1239_v12  ;;  %1333 = vmatpush3.bf16.msra.mxu0 %v1463_v23  ;;  %v1251_v44 = vcombine.high %v105_v38, %v109_v39  ;;  %v1465_v46 = vld [vmem:[#allocation8 + $0xc0] sm:$0xff]   ;;  %v1250_v47 = vcombine.low %v105_v38, %v109_v39  ;;  %v1469_v49 = vld [vmem:[#allocation8 + $0xc8] sm:$0xff]   ;;  %v1473_v51 = vld [vmem:[#allocation8 + $0xd0] sm:$0xff]  }
  0x65   :  { %1334 = vmatprep.subr.bf16.mxu0 %v1464_v24  ;;  %v1467_v48 = vld [vmem:[#allocation8 + $0x80] sm:$0xff]   ;;  %v1471_v50 = vld [vmem:[#allocation8 + $0x88] sm:$0xff]   ;;  %v1475_v52 = vld [vmem:[#allocation8 + $0x90] sm:$0xff]  }
  0x66   :  { %1252 = vmatmul.mubr.msk.bf16.vlgmr.msra.gmra.mrb[0].mxu1 %vm232_vm0, %v1796_v16  ;;  %v1477_v53 = vld [vmem:[#allocation8 + $0xd8] sm:$0xff]   ;;  %v1480_v55 = vld [vmem:[#allocation8 + $0x70] sm:$0xff]   ;;  %v1481_v56 = vld [vmem:[#allocation8 + $0xe0] sm:$0xff]  }
  0x67   :  { %278 = vmatpush1.bf16.msra.mxu1 %v1238_v18  ;;  %309 = vmatprep.mubr.bf16.mxu1 %v1685_v0  ;;  %v1479_v54 = vld [vmem:[#allocation8 + $0x98] sm:$0xff]   ;;  %v1482_v57 = vld [vmem:[#allocation8 + $0x30] sm:$0xff]   ;;  %v1483_v58 = vld [vmem:[#allocation8 + $0xa0] sm:$0xff]   ;;  %v126_v18 = vsub.s32 3, %v1809_v6 }
  0x68   :  { %279 = vmatprep.subr.bf16.mxu1 %v1247_v22  ;;  %1335 = vmatpush3.bf16.msra.mxu0 %v1466_v29  ;;  %v1484_v59 = vld [vmem:[#allocation8 + $0x78] sm:$0xff]   ;;  %v1485_v60 = vld [vmem:[#allocation8 + $0xe8] sm:$0xff]   ;;  %v1488_v63 = vld [vmem:[#allocation8 + $0xf0] sm:$0xff]  }
  0x69   :  { %1336 = vmatprep.subr.bf16.mxu0 %v1468_v30  ;;  %v1486_v61 = vld [vmem:[#allocation8 + $0x38] sm:$0xff]   ;;  %v1487_v62 = vld [vmem:[#allocation8 + $0xa8] sm:$0xff]   ;;  %v1490_v1 = vld [vmem:[#allocation8 + $0xb0] sm:$0xff]  }
  0x6a   :  { %v1492_v2 = vld [vmem:[#allocation8 + $0xf8] sm:$0xff]   ;;  %v1497_v4 = vld [vmem:[#allocation8 + $0x1c0] sm:$0xff]   ;;  %v1493_v27 = vld [vmem:[#allocation8 + $0x148] sm:$0xff]  }
  0x6b   :  { %280 = vmatpush1.bf16.msra.mxu1 %v1246_v25  ;;  %v1494_v3 = vld [vmem:[#allocation8 + $0xb8] sm:$0xff]   ;;  %v1491_v25 = vld [vmem:[#allocation8 + $0x100] sm:$0xff]   ;;  %v1495_v33 = vld [vmem:[#allocation8 + $0x108] sm:$0xff]  }
  0x6c   :  { %318 = vmatprep.subr.bf16.mxu1 %v1241_v28  ;;  %1337 = vmatpush3.bf16.msra.mxu0 %v1470_v35  ;;  %v1812_v8 = vld [vmem:[#allocation7] sm:$0xff] }
  0x6d   :  { %1338 = vmatprep.subr.bf16.mxu0 %v1472_v36  ;;  %v115_v10 = vrot.slane %v1812_v8, %v114_v7  ;;  %v119_v11 = vrot.slane %v1812_v8, %v118_v9  ;;  %v123_v22 = vrot.slane %v1812_v8, %v122_v15  ;;  %v127_v24 = vrot.slane %v1812_v8, %v126_v18  ;;  %v1512_v9 = vld [vmem:[#allocation8 + $0x170] sm:$0xff]   ;;  %v1517_v18 = vld [vmem:[#allocation8 + $0x1e8] sm:$0xff]  }
  0x6e   :  { %1253 = vmatmul.mubr.msk.bf16.vlgmr.msra.gmra.mrb[4].mxu1 %vm232_vm0, %v1796_v16 }
  0x6f   :  { %319 = vmatpush1.bf16.msra.mxu1 %v1240_v31  ;;  %350 = vmatprep.mubr.bf16.mxu1 %v1685_v0 }
  0x70   :  { %320 = vmatprep.subr.bf16.mxu1 %v1249_v34  ;;  %1339 = vmatpush3.bf16.msra.mxu0 %v1474_v41  ;;  %v134_v34 = vsub.s32 5, %v1809_v6  ;;  %v1499_v41 = vld [vmem:[#allocation8 + $0x180] sm:$0xff]  }
  0x71   :  { %1340 = vmatprep.subr.bf16.mxu0 %v1476_v42 }
  0x72   :  { %v135_v42 = vrot.slane %v1812_v8, %v134_v34  ;;  %v1527_v34 = vld [vmem:[#allocation10 + $0x18] sm:$0xff]  }
  0x73   :  { %321 = vmatpush1.bf16.msra.mxu1 %v1248_v37  ;;  %v1496_v37 = vld [vmem:[#allocation8 + $0x150] sm:$0xff]  }
  0x74   :  { %359 = vmatprep.subr.bf16.mxu1 %v1243_v40  ;;  %1341 = vmatpush3.bf16.msra.mxu0 %v1478_v45  ;;  %v1498_v40 = vld [vmem:[#allocation8 + $0x110] sm:$0xff]   ;;  %v1501_v45 = vld [vmem:[#allocation8 + $0x1c8] sm:$0xff]  }
  0x75   :  { %1342 = vmatprep.subr.bf16.mxu0 %v1480_v55 }
  0x76   :  { %1254 = vmatmul.mubr.msk.bf16.vlgmr.msra.gmra.mrb[8].mxu1 %vm232_vm0, %v1796_v16 }
  0x77   :  { %360 = vmatpush1.bf16.msra.mxu1 %v1242_v43  ;;  %391 = vmatprep.mubr.bf16.mxu1 %v1685_v0  ;;  %v1489_v0 = vld [vmem:[#allocation8 + $0x140] sm:$0xff]  }
  0x78   :  { %361 = vmatprep.subr.bf16.mxu1 %v1251_v44  ;;  %1343 = vmatpush3.bf16.msra.mxu0 %v1482_v57  ;;  %v1500_v44 = vld [vmem:[#allocation8 + $0x158] sm:$0xff]   ;;  %v1506_v57 = vld [vmem:[#allocation8 + $0x120] sm:$0xff]  }
  0x79   :  { %1344 = vmatprep.subr.bf16.mxu0 %v1484_v59 }
  0x7b   :  { %362 = vmatpush1.bf16.msra.mxu1 %v1250_v47 }
  0x7c   :  { %1352 = vmatprep.subr.bf16.mxu1 %v1465_v46  ;;  %1345 = vmatpush3.bf16.msra.mxu0 %v1486_v61  ;;  %v1508_v61 = vld [vmem:[#allocation8 + $0x168] sm:$0xff]  }
  0x7d   :  { %1374 = vmatprep.subr.bf16.mxu0 %v1489_v0 }
  0x7e   :  { %1255 = vmatmul.mubr.msk.bf16.vlgmr.msra.gmra.mrb[12].mxu1 %vm232_vm0, %v1796_v16 }
  0x7f   :  { %1353 = vmatpush3.bf16.msra.mxu1 %v1467_v48  ;;  %v1502_v48 = vld [vmem:[#allocation8 + $0x118] sm:$0xff]  }
  0x80   :  { %1354 = vmatprep.subr.bf16.mxu1 %v1469_v49  ;;  %v1503_v49 = vld [vmem:[#allocation8 + $0x188] sm:$0xff]  }
  0x83   :  { %1355 = vmatpush3.bf16.msra.mxu1 %v1471_v50 }
  0x84   :  { %1356 = vmatprep.subr.bf16.mxu1 %v1473_v51 }
  0x87   :  { %1357 = vmatpush3.bf16.msra.mxu1 %v1475_v52  ;;  %v142_v52 = vsub.s32 7, %v1809_v6 }
  0x88   :  { %1358 = vmatprep.subr.bf16.mxu1 %v1477_v53  ;;  %v1504_v53 = vld [vmem:[#allocation8 + $0x160] sm:$0xff]  }
  0x8b   :  { %1359 = vmatpush3.bf16.msra.mxu1 %v1479_v54  ;;  %v1505_v54 = vld [vmem:[#allocation8 + $0x1d0] sm:$0xff]  }
  0x8c   :  { %1360 = vmatprep.subr.bf16.mxu1 %v1481_v56 }
  0x8f   :  { %1361 = vmatpush3.bf16.msra.mxu1 %v1483_v58  ;;  %v1507_v58 = vld [vmem:[#allocation8 + $0x190] sm:$0xff]  }
  0x90   :  { %1362 = vmatprep.subr.bf16.mxu1 %v1485_v60  ;;  %v143_v60 = vrot.slane %v1812_v8, %v142_v52 }
  0x93   :  { %1363 = vmatpush3.bf16.msra.mxu1 %v1487_v62  ;;  %v1509_v62 = vld [vmem:[#allocation8 + $0x1d8] sm:$0xff]  }
  0x94   :  { %1364 = vmatprep.subr.bf16.mxu1 %v1488_v63  ;;  %v130_v63 = vsub.s32 4, %v1809_v6 }
  0x96   :  { %v131_v7 = vrot.slane %v1812_v8, %v130_v63 }
  0x97   :  { %1365 = vmatpush3.bf16.msra.mxu1 %v1490_v1 }
  0x98   :  { %1366 = vmatprep.subr.bf16.mxu1 %v1492_v2  ;;  %v1510_v2 = vld [vmem:[#allocation8 + $0x128] sm:$0xff]  }
  0x9b   :  { %1367 = vmatpush3.bf16.msra.mxu1 %v1494_v3  ;;  %v1511_v3 = vld [vmem:[#allocation8 + $0x198] sm:$0xff]  }
  0x9c   :  { %1396 = vmatprep.subr.bf16.mxu1 %v1497_v4 }
 0x139   :  { %v270_v12 = vpop.f32.mrb[0].mxu1 }
 0x13a   :  { %v271_v13 = vadd.f32 %v270_v12, %v115_v10  ;;  %v272_v14 = vpop.f32.mrb[1].mxu1  ;;  %v1513_v10 = vld [vmem:[#allocation8 + $0x1e0] sm:$0xff]  }
 0x13b   :  { %v273_v16 = vadd.f32 %v272_v14, %v119_v11  ;;  %v274_v17 = vpop.f32.mrb[2].mxu1  ;;  %v1515_v14 = vld [vmem:[#allocation8 + $0x1a0] sm:$0xff]  }
 0x13c   :  { %v400_v19 = vmax.f32 %v271_v13, 0.0  ;;  %v275_v20 = vpop.f32.mrb[3].mxu1  ;;  %v1514_v13 = vld [vmem:[#allocation8 + $0x130] sm:$0xff]   ;;  %v1516_v17 = vld [vmem:[#allocation8 + $0x178] sm:$0xff]  }
 0x13d   :  { %v401_v21 = vmax.f32 %v273_v16, 0.0  ;;  %v1518_v20 = vld [vmem:[#allocation8 + $0x138] sm:$0xff]  }
 0x13e   :  { %v408_v26 = vpack.c.bf16 %v400_v19, %v400_v19  ;;  %v138_v19 = vsub.s32 6, %v1809_v6  ;;  %v1523_v6 = vld [vmem:[#allocation8 + $0x1b8] sm:$0xff]  }
 0x13f   :  { %v409_v23 = vpack.c.bf16 %v401_v21, %v401_v21  ;;  %v1519_v21 = vld [vmem:[#allocation8 + $0x1a8] sm:$0xff]  }
 0x141   :  { %v311_v28 = vpop.f32.mrb[4].mxu1  ;;  %967 = vmatprep.mubr.bf16.mxu0 %v409_v23  ;;  %v139_v23 = vrot.slane %v1812_v8, %v138_v19  ;;  %v1525_v8 = vld [vmem:[#allocation10 + $0x8] sm:$0xff]  }
 0x142   :  { %v312_v29 = vadd.f32 %v311_v28, %v123_v22  ;;  %v313_v30 = vpop.f32.mrb[5].mxu1  ;;  %968 = vmatmul.mubr.bf16.vlgmr.msra.gmra.mrb[0].mxu0 %v408_v26  ;;  %v1522_v28 = vld [vmem:[#allocation8 + $0x1f8] sm:$0xff]  }
 0x143   :  { %v314_v31 = vadd.f32 %v313_v30, %v127_v24  ;;  %1375 = vmatpush3.bf16.msra.mxu0 %v1491_v25  ;;  %v315_v32 = vpop.f32.mrb[6].mxu1  ;;  %v1520_v24 = vld [vmem:[#allocation8 + $0x1f0] sm:$0xff]  }
 0x144   :  { %v402_v35 = vmax.f32 %v312_v29, 0.0  ;;  %v316_v36 = vpop.f32.mrb[7].mxu1  ;;  %1376 = vmatprep.subr.bf16.mxu0 %v1493_v27  ;;  %v1521_v25 = vld [vmem:[#allocation8 + $0x1b0] sm:$0xff]   ;;  %v1686_v32 = vmov 0.0  }
 0x145   :  { %v403_v38 = vmax.f32 %v314_v31, 0.0  ;;  %v1524_v31 = vld [vmem:[#allocation10] sm:$0xff]   ;;  %v1529_v36 = vld [vmem:[#allocation10 + $0x28] sm:$0xff]  }
 0x146   :  { %v410_v43 = vpack.c.bf16 %v402_v35, %v402_v35  ;;  %v1528_v35 = vld [vmem:[#allocation10 + $0x20] sm:$0xff]  }
 0x147   :  { %v411_v39 = vpack.c.bf16 %v403_v38, %v403_v38  ;;  %1377 = vmatpush3.bf16.msra.mxu0 %v1495_v33  ;;  %v1526_v33 = vld [vmem:[#allocation10 + $0x10] sm:$0xff]   ;;  %v1531_v38 = vld [vmem:[#allocation10 + $0x38] sm:$0xff]  }
 0x148   :  { %1378 = vmatprep.subr.bf16.mxu0 %v1496_v37  ;;  %v1530_v37 = vld [vmem:[#allocation10 + $0x30] sm:$0xff]  }
 0x149   :  { %1007 = vmatprep.mubr.bf16.mxu1 %v411_v39  ;;  %v352_v46 = vpop.f32.mrb[8].mxu1 }
 0x14a   :  { %1008 = vmatmul.mubr.bf16.vlgmr.msra.gmra.mrb[16].mxu1 %v410_v43  ;;  %v354_v47 = vpop.f32.mrb[9].mxu1  ;;  %v353_v16 = vadd.f32 %v352_v46, %v131_v7 }
 0x14b   :  { %1379 = vmatpush3.bf16.msra.mxu0 %v1498_v40  ;;  %1397 = vmatpush3.bf16.msra.mxu1 %v1499_v41  ;;  %v355_v50 = vadd.f32 %v354_v47, %v135_v42  ;;  %v356_v51 = vpop.f32.mrb[10].mxu1 }
 0x14c   :  { %1380 = vmatprep.subr.bf16.mxu0 %v1500_v44  ;;  %1398 = vmatprep.subr.bf16.mxu1 %v1501_v45  ;;  %v357_v55 = vpop.f32.mrb[11].mxu1  ;;  %v404_v22 = vmax.f32 %v353_v16, 0.0  ;;  %v1256_v44 = vld [vmem:[%s1851_s4] ss:$0 sm:$0xff] }
 0x14d   :  { %v405_v56 = vmax.f32 %v355_v50, 0.0 }
 0x14e   :  { %v412_v26 = vpack.c.bf16 %v404_v22, %v404_v22 }
 0x14f   :  { %1381 = vmatpush3.bf16.msra.mxu0 %v1502_v48  ;;  %1399 = vmatpush3.bf16.msra.mxu1 %v1503_v49  ;;  %v413_v59 = vpack.c.bf16 %v405_v56, %v405_v56 }
 0x150   :  { %1382 = vmatprep.subr.bf16.mxu0 %v1504_v53  ;;  %1400 = vmatprep.subr.bf16.mxu1 %v1505_v54 }
 0x151   :  { %v393_v0 = vpop.f32.mrb[12].mxu1  ;;  %1047 = vmatprep.mubr.bf16.mxu0 %v413_v59 }
 0x152   :  { %v395_v1 = vpop.f32.mrb[13].mxu1  ;;  %v394_v27 = vadd.f32 %v393_v0, %v139_v23 }
 0x153   :  { %1383 = vmatpush3.bf16.msra.mxu0 %v1506_v57  ;;  %1401 = vmatpush3.bf16.msra.mxu1 %v1507_v58  ;;  %v396_v4 = vadd.f32 %v395_v1, %v143_v60  ;;  %v397_v5 = vpop.f32.mrb[14].mxu1 }
 0x154   :  { %1384 = vmatprep.subr.bf16.mxu0 %v1508_v61  ;;  %1402 = vmatprep.subr.bf16.mxu1 %v1509_v62  ;;  %v398_v11 = vpop.f32.mrb[15].mxu1  ;;  %v406_v29 = vmax.f32 %v394_v27, 0.0 }
 0x155   :  { %v407_v12 = vmax.f32 %v396_v4, 0.0 }
 0x156   :  { %v414_v30 = vpack.c.bf16 %v406_v29, %v406_v29 }
 0x157   :  { %1385 = vmatpush3.bf16.msra.mxu0 %v1510_v2  ;;  %1403 = vmatpush3.bf16.msra.mxu1 %v1511_v3  ;;  %v415_v15 = vpack.c.bf16 %v407_v12, %v407_v12  ;;  %v1321_v2 = vld [vmem:[%s1853_s6] ss:$0 sm:$0xff]  ;;  %s1646_s6 = scalar_lea.vmem %s1226_s16, 64 }
 0x158   :  { %1386 = vmatprep.subr.bf16.mxu0 %v1512_v9  ;;  %1404 = vmatprep.subr.bf16.mxu1 %v1513_v10  ;;  %p1647_p12 = scmp.ne.s32.totalorder %s1226_s16, %s1646_s6  ;;  %p1652_p0 = scmp.lt.s32.totalorder %s1646_s6, %s1646_s6 }
 0x159   :  { %1087 = vmatprep.mubr.bf16.mxu1 %v415_v15 }
 0x15a   :  { %p1653_p1 = por %p1652_p0, %p1651_p13 }
 0x15b   :  { %1387 = vmatpush3.bf16.msra.mxu0 %v1514_v13  ;;  %1405 = vmatpush3.bf16.msra.mxu1 %v1515_v14 }
 0x15c   :  { %1388 = vmatprep.subr.bf16.mxu0 %v1516_v17  ;;  %1406 = vmatprep.subr.bf16.mxu1 %v1517_v18  ;;  %p1654_p2 = pnand %p1653_p1, %p1647_p12 }
 0x15f   :  { %1389 = vmatpush3.bf16.msra.mxu0 %v1518_v20  ;;  %1407 = vmatpush3.bf16.msra.mxu1 %v1519_v21 }
 0x160   :  { %1408 = vmatprep.subr.bf16.mxu1 %v1520_v24  ;;  %1427 = vmatprep.subr.bf16.mxu0 %v1686_v32 }
 0x162   :  { %1048 = vmatmul.mubr.bf16.vlgmr.msra.gmra.mrb[4].mxu0 %v412_v26 }
 0x163   :  { %1409 = vmatpush3.bf16.msra.mxu1 %v1521_v25  ;;  %1428 = vmatpush3.bf16.msra.mxu0 %v1524_v31 }
 0x164   :  { %1410 = vmatprep.subr.bf16.mxu1 %v1522_v28  ;;  %1429 = vmatprep.subr.bf16.mxu0 %v1686_v32 }
 0x165   :  { %1443 = vmatprep.mubr.msk.bf16.mxu0 %vm1687_vm1, %v1686_v32 }
 0x167   :  { %1411 = vmatpush3.bf16.msra.mxu1 %v1523_v6  ;;  %1430 = vmatpush3.bf16.msra.mxu0 %v1525_v8 }
 0x168   :  { %1431 = vmatprep.subr.bf16.mxu0 %v1686_v32 }
 0x16a   :  { %1088 = vmatmul.mubr.bf16.vlgmr.msra.gmra.mrb[20].mxu1 %v414_v30 }
 0x16b   :  { %1432 = vmatpush3.bf16.msra.mxu0 %v1526_v33 }
 0x16c   :  { %1433 = vmatprep.subr.bf16.mxu0 %v1686_v32 }
 0x16f   :  { %1434 = vmatpush3.bf16.msra.mxu0 %v1527_v34 }
 0x170   :  { %1435 = vmatprep.subr.bf16.mxu0 %v1686_v32 }
 0x173   :  { %1436 = vmatpush3.bf16.msra.mxu0 %v1528_v35 }
 0x174   :  { %1437 = vmatprep.subr.bf16.mxu0 %v1686_v32 }
 0x177   :  { %1438 = vmatpush3.bf16.msra.mxu0 %v1529_v36 }
 0x178   :  { %1439 = vmatprep.subr.bf16.mxu0 %v1686_v32 }
 0x17b   :  { %1440 = vmatpush3.bf16.msra.mxu0 %v1530_v37 }
 0x17c   :  { %1441 = vmatprep.subr.bf16.mxu0 %v1686_v32 }
 0x17f   :  { %1442 = vmatpush3.bf16.msra.mxu0 %v1531_v38 }
 0x215   :  { %v1346_v39 = vpop.f32.mrb[0].mxu0 }
 0x216   :  { %v1347_v40 = vpop.f32.mrb[1].mxu0 }
 0x217   :  { %v1348_v41 = vadd.f32 %v1347_v40, %v1346_v39  ;;  %v1349_v42 = vpop.f32.mrb[2].mxu0 }
 0x218   :  { %v1350_v43 = vpop.f32.mrb[3].mxu0 }
 0x219   :  { %v970_v47 = vadd.f32 %v1348_v41, %v1256_v44 }
 0x21d   :  { %v1368_v45 = vpop.f32.mrb[16].mxu1 }
 0x21e   :  { %v1369_v46 = vpop.f32.mrb[17].mxu1 }
 0x21f   :  { %v1370_v48 = vadd.f32 %v1369_v46, %v1368_v45  ;;  %v1371_v49 = vpop.f32.mrb[18].mxu1 }
 0x220   :  { %v1372_v50 = vpop.f32.mrb[19].mxu1 }
 0x221   :  { %v1010_v51 = vadd.f32 %v1370_v48, %v970_v47 }
 0x235   :  { %v1390_v52 = vpop.f32.mrb[4].mxu0 }
 0x236   :  { %v1391_v53 = vpop.f32.mrb[5].mxu0 }
 0x237   :  { %v1392_v54 = vadd.f32 %v1391_v53, %v1390_v52  ;;  %v1393_v55 = vpop.f32.mrb[6].mxu0 }
 0x238   :  { %v1394_v56 = vpop.f32.mrb[7].mxu0 }
 0x239   :  { %v1050_v57 = vadd.f32 %v1392_v54, %v1010_v51 }
 0x23d   :  { %v1412_v58 = vpop.f32.mrb[20].mxu1 }
 0x23e   :  { %v1413_v59 = vpop.f32.mrb[21].mxu1 }
 0x23f   :  { %v1414_v60 = vadd.f32 %v1413_v59, %v1412_v58  ;;  %v1415_v61 = vpop.f32.mrb[22].mxu1 }
 0x240   :  { %v1416_v62 = vpop.f32.mrb[23].mxu1 }
 0x241   :  { %v1090_v63 = vadd.f32 %v1414_v60, %v1050_v57 }
 0x243   :  { %v1095_v0 = vmax.f32 %v1090_v63, 0.0 }
 0x245   :  { %v1096_v1 = vpack.c.bf16 %v1095_v0, %v1095_v0 }
 0x247   :  { %1444 = vmatmul.mubr.bf16.vlgmr.msra.gmra.mrb[8].mxu0 %v1096_v1 }
 0x31a   :  { %v1202_v3 = vpop.f32.mrb[8].mxu0 }
 0x31b   :  { %v1203_v4 = vadd.f32 %v1321_v2, %v1202_v3  ;;  %v1445_v5 = vpop.f32.mrb[9].mxu0 }
 0x31c   :  { %v1205_v7 = vpop.f32.mrb[10].mxu0 }
 0x31d   :  { %1208 = vmax.xlane.f32.xlu0 %v1203_v4  ;;  %v1446_v9 = vpop.f32.mrb[11].mxu0 }
 0x3aa   :  { %v1209_v10 = vpop.xlane.xlu0 %1208 }
 0x3ab   :  { %v1210_v11 = vsub.f32 %v1203_v4, %v1209_v10 }
 0x3ad   :  { %v1211_v12 = vmul.f32 1.442695, %v1210_v11 }
 0x3af   :  { %1532 = vpow2.f32 %v1211_v12 }
 0x3b9   :  { %v1533_v13 = vpop.eup %1532 }
 0x3ba   :  { %1213 = vadd.xlane.f32.xlu0 %v1533_v13 }
 0x447   :  { %v1214_v14 = vpop.xlane.xlu0 %1213 }
 0x448   :  { %1534 = vrcp.f32 %v1214_v14 }
 0x452   :  { %v1535_v15 = vpop.eup %1534 }
 0x453   :  { %v1216_v16 = vmul.f32 %v1535_v15, %v1533_v13 }
 0x455   :  { %v1217_v17 = vpack.c.bf16 %v1216_v16, %v1216_v16 }
 0x457   :  { %1218 = vst [vmem:[#allocation11] sm:$0xf] %v1217_v17 }
 0x458   :  { %1657 = shalt.err (!%p1654_p2)
}
 0x459   :  { %s1658_s19 = scalar_lea.hbm %s1854_s7, 64 }
 0x45a   :  { %p1659_p3 = scmp.ne.s32.totalorder %s1854_s7, %s1658_s19  ;;  %p1662_p4 = scmp.lt.u32.totalorder %s1658_s19, %s1854_s7 }
 0x45c   :  { %p1664_p5 = pnand %p1662_p4, %p1659_p3 }
 0x45e   :  { %1667 = shalt.err (!%p1664_p5)
}
 0x45f   :  { %1228 = dma.vmem_to_hbm [thread:$0]  %s1226_s16, 64, %s1854_s7, [#allocation4]  }
 0x460   :  { %1674 = dma.done.wait [#allocation4], 64  }
 0x461   :  { %1675 = vsyncadd [#allocation4], 4294967232 }
 0x462   :  { %1232 = vsyncpa [#allocation3], 1 }
 0x463   :  { %1233 = vsyncpa [#allocation6], 1 }
 0x464   :  { %1234 = vsyncpa [#allocation9], 1 }
 0x465   :  { %1235 = vsyncpa [#allocation4], 1 }

</bundles_post_ra>
